<compile_context>
chip_gen: v7x
topology: tpu7x:2x2x1
jax: 0.10.0
libtpu: 0.0.40
codegen_flags: <defaults>
</compile_context>

<pallas_src>
import functools
import math

import jax
import jax.numpy as jnp
import numpy as np
from jax.experimental import pallas as pl
from jax.experimental.pallas import tpu as pltpu


def autopad(k, p=None):
    if p is None:
        p = k // 2 if isinstance(k, int) else [x // 2 for x in k]
    return p


def _pick_vmem_limit():
    """Per-generation scoped-VMEM limit: ~5/8 of physical, capped, safe fallback."""
    default = 40 * 1024 * 1024          # fits v7x (64 MiB physical) and smaller
    try:
        cap = pltpu.get_tpu_info().vmem_capacity_bytes
    except Exception:
        return default
    return max(default, min(int(cap) * 5 // 8, 96 * 1024 * 1024))


def convnp_kernel(x_ref, w_ref, g_ref, b_ref, o_ref, *scratch,
                  k, s, c1, c2, ho, wo, wq, act, eps):
    """Fused conv + GroupNorm(1, c2) + ReLU for one sample.

    x_ref: (P, C1, Hq*Wq) bf16   polyphase planes (P = min(k,s)^2), spatial on lanes
    w_ref: (C2, k*k*C1)   bf16   conv weights, tap-major contraction axis
    g_ref/b_ref: (C2, 1)  f32    GroupNorm affine
    o_ref: (C2, Ho*Wq)           output, flattened spatial on lanes
    scratch (only when k > s): (k*k*C1, Ho*Wq) bf16 VMEM im2col buffer
    """
    hwq = ho * wq
    kk = k * k

    # ---- fused im2col -> single big-K MXU matmul -------------------------
    if k <= s:
        # Every tap window starts at offset 0 of its own phase plane: the
        # stacked im2col is just the input block reshaped (no shifts/copies).
        im2col = x_ref[...].reshape(kk * c1, hwq)
    else:
        col_ref = scratch[0]
        for i in range(k):
            for j in range(k):
                ph = (i % s) * s + (j % s)
                start = (i // s) * wq + (j // s)          # static Python int
                t = i * k + j
                col_ref[t * c1:(t + 1) * c1, :] = x_ref[ph, :, start:start + hwq]
        im2col = col_ref[...]

    acc = jnp.dot(w_ref[...], im2col,
                  preferred_element_type=jnp.float32)     # (C2, hwq) f32

    # ---- GroupNorm(1, c2): two-pass f32 stats over the valid columns -----
    n = float(c2 * ho * wo)
    if wq == wo:                                          # no garbage columns
        mean = jnp.sum(acc) / n
        d = acc - mean
        var = jnp.sum(d * d) / n
    else:                                                 # mask built in-kernel
        lane = jax.lax.broadcasted_iota(jnp.int32, (1, hwq), 1)
        valid = (lane % wq < wo).astype(jnp.float32)      # (1, hwq)
        mean = jnp.sum(acc * valid) / n
        d = acc - mean
        dm = d * valid
        var = jnp.sum(dm * dm) / n
    inv = jax.lax.rsqrt(var + eps)

    scale = g_ref[...] * inv                              # (C2, 1)
    y = d * scale + b_ref[...]
    if act:
        y = jnp.maximum(y, 0.0)
    o_ref[...] = y.astype(o_ref.dtype)


def convnp_forward(x, weight, gamma, beta, k=1, s=1, p=None, act=True, eps=1e-5,
                   matmul_dtype=jnp.bfloat16, out_dtype=None):
    """ConvNP forward. x: (N, C1, H, W); weight: (C2, C1, k, k); gamma/beta: (C2,)."""
    N, C1, H, W = x.shape
    C2 = weight.shape[0]
    pad = autopad(k, p)
    out_dtype = x.dtype if out_dtype is None else out_dtype

    Ho = (H + 2 * pad - k) // s + 1
    Wo = (W + 2 * pad - k) // s + 1
    qmax = (k - 1) // s
    Hq = Ho + qmax + (1 if qmax > 0 else 0)   # spare zero row keeps tap slices in bounds
    Wq = Wo + qmax
    HWq = Ho * Wq
    Ht, Wt = s * Hq, s * Wq

    # Single zero-pad straight to the polyphase extent (skipped if no-op);
    # crop only in the rare k<=s corner where Ht/Wt < H+2*pad.
    pb = max(0, Ht - H - pad)
    pr = max(0, Wt - W - pad)
    xb = x.astype(matmul_dtype)
    if (pad, pb, pr) != (0, 0, 0):
        xb = jnp.pad(xb, ((0, 0), (0, 0), (pad, pb), (pad, pr)))
    if xb.shape[2] != Ht or xb.shape[3] != Wt:
        xb = xb[:, :, :Ht, :Wt]

    # Polyphase split (no data expansion).  s == 1 needs no transpose; only the
    # min(k,s)^2 phases the taps actually reference are materialized.
    m = min(k, s)
    P = m * m
    if s == 1:
        xph = xb.reshape(N, 1, C1, Hq * Wq)
    else:
        x6 = xb.reshape(N, C1, Hq, s, Wq, s)
        if m < s:
            x6 = x6[:, :, :, :m, :, :m]
        xph = x6.transpose(0, 3, 5, 1, 2, 4).reshape(N, P, C1, Hq * Wq)

    # Weights for the single big-K matmul: (C2, k*k*C1), tap-major then C1.
    wb = weight.transpose(0, 2, 3, 1).reshape(C2, k * k * C1).astype(matmul_dtype)
    g2 = gamma.reshape(C2, 1).astype(jnp.float32)
    b2 = beta.reshape(C2, 1).astype(jnp.float32)

    scratch = [] if k <= s else [pltpu.VMEM((k * k * C1, HWq), matmul_dtype)]
    kern = functools.partial(convnp_kernel, k=k, s=s, c1=C1, c2=C2,
                             ho=Ho, wo=Wo, wq=Wq, act=act, eps=float(eps))

    out = pl.pallas_call(
        kern,
        out_shape=jax.ShapeDtypeStruct((N, C2, HWq), out_dtype),
        grid_spec=pltpu.PrefetchScalarGridSpec(
            num_scalar_prefetch=0,
            grid=(N,),
            in_specs=[
                pl.BlockSpec((None, P, C1, Hq * Wq), lambda n: (n, 0, 0, 0)),
                pl.BlockSpec((C2, k * k * C1), lambda n: (0, 0)),
                pl.BlockSpec((C2, 1), lambda n: (0, 0)),
                pl.BlockSpec((C2, 1), lambda n: (0, 0)),
            ],
            out_specs=pl.BlockSpec((None, C2, HWq), lambda n: (n, 0, 0)),
            scratch_shapes=scratch,
        ),
        compiler_params=pltpu.CompilerParams(
            dimension_semantics=("parallel",),
            vmem_limit_bytes=_pick_vmem_limit(),
        ),
    )(xph, wb, g2, b2)

    y = out.reshape(N, C2, Ho, Wq)
    if Wq != Wo:
        y = y[:, :, :, :Wo]     # drop the (Wq-Wo) garbage columns (only when k > s)
    return y


def convnp_reference(x, weight, gamma, beta, k=1, s=1, p=None, act=True, eps=1e-5):
    pad = autopad(k, p)
    y = jax.lax.conv_general_dilated(
        x, weight, window_strides=(s, s), padding=((pad, pad), (pad, pad)),
        dimension_numbers=("NCHW", "OIHW", "NCHW"))
    mean = jnp.mean(y, axis=(1, 2, 3), keepdims=True)
    var = jnp.var(y, axis=(1, 2, 3), keepdims=True)
    yn = (y - mean) * jax.lax.rsqrt(var + eps)
    yn = yn * gamma[None, :, None, None] + beta[None, :, None, None]
    return jnp.maximum(yn, 0.0) if act else yn


if __name__ == "__main__":
    key = jax.random.PRNGKey(0)
    kx, kw1, kw2, kg, kb = jax.random.split(key, 5)

    N, C1, C2, H, W = 2, 4, 8, 16, 16
    x = jax.random.normal(kx, (N, C1, H, W), dtype=jnp.float32)
    gamma = 1.0 + 0.1 * jax.random.normal(kg, (C2,), dtype=jnp.float32)
    beta = 0.1 * jax.random.normal(kb, (C2,), dtype=jnp.float32)

    # Case 1: module defaults (k=1, s=1) -> no shifts, no mask, no output slice.
    k1 = 1
    w1 = jax.random.normal(kw1, (C2, C1, k1, k1), dtype=jnp.float32) / math.sqrt(C1 * k1 * k1)
    out1 = jax.block_until_ready(convnp_forward(x, w1, gamma, beta, k=k1, s=1))
    ref1 = convnp_reference(x, w1, gamma, beta, k=k1, s=1)
    np.testing.assert_allclose(np.asarray(out1), np.asarray(ref1), rtol=3e-2, atol=3e-2)

    # Case 2: k=3, s=2 -> autopad + strided polyphase + in-VMEM im2col path.
    k2, s2 = 3, 2
    w2 = jax.random.normal(kw2, (C2, C1, k2, k2), dtype=jnp.float32) / math.sqrt(C1 * k2 * k2)
    out2 = jax.block_until_ready(convnp_forward(x, w2, gamma, beta, k=k2, s=s2))
    ref2 = convnp_reference(x, w2, gamma, beta, k=k2, s=s2)
    np.testing.assert_allclose(np.asarray(out2), np.asarray(ref2), rtol=3e-2, atol=3e-2)

    print("KERNEL_OK")
</pallas_src>

<mosaic_0001>
module attributes {stable_mosaic.version = 11 : i64} {
  func.func @convnp_kernel(%arg0: i32, %arg1: memref<1x1x4x256xbf16, #tpu.memory_space<vmem>>, %arg2: memref<8x4xbf16, #tpu.memory_space<vmem>>, %arg3: memref<8x1xf32, #tpu.memory_space<vmem>>, %arg4: memref<8x1xf32, #tpu.memory_space<vmem>>, %arg5: memref<1x8x256xf32, #tpu.memory_space<vmem>>) attributes {dimension_semantics = [#tpu.dimension_semantics<parallel>], iteration_bounds = array<i64: 2>, scalar_prefetch = 0 : i64, scratch_operands = 0 : i64, tpu.core_type = #tpu.core_type<tc>, window_params = [{transform_indices = @transform_0, window_bounds = array<i64: 1, 1, 4, 256>}, {pipeline_mode = #tpu.pipeline_mode<synchronous>, transform_indices = @transform_1, window_bounds = array<i64: 8, 4>}, {pipeline_mode = #tpu.pipeline_mode<synchronous>, transform_indices = @transform_2, window_bounds = array<i64: 8, 1>}, {pipeline_mode = #tpu.pipeline_mode<synchronous>, transform_indices = @transform_3, window_bounds = array<i64: 8, 1>}, {transform_indices = @transform_4, window_bounds = array<i64: 1, 8, 256>}]} {
    %c0 = arith.constant 0 : index
    %c0_0 = arith.constant 0 : index
    %c0_1 = arith.constant 0 : index
    %c0_2 = arith.constant 0 : index
    %0 = vector.load %arg1[%c0, %c0_0, %c0_1, %c0_2] : memref<1x1x4x256xbf16, #tpu.memory_space<vmem>>, vector<1x1x4x256xbf16>
    %1 = vector.shape_cast %0 : vector<1x1x4x256xbf16> to vector<1x4x256xbf16>
    %2 = vector.shape_cast %1 : vector<1x4x256xbf16> to vector<4x256xbf16>
    %c0_3 = arith.constant 0 : index
    %c0_4 = arith.constant 0 : index
    %3 = vector.load %arg2[%c0_3, %c0_4] : memref<8x4xbf16, #tpu.memory_space<vmem>>, vector<8x4xbf16>
    %cst = arith.constant dense<0.000000e+00> : vector<8x256xf32>
    %4 = tpu.matmul %3, %2, %cst {dimension_numbers = #tpu.dot_dimension_numbers<[1], [0], [0], [1], [0, 0, 1, 1], [], []>} : vector<8x4xbf16>, vector<4x256xbf16>, vector<8x256xf32> -> vector<8x256xf32>
    %5 = vector.shape_cast %4 : vector<8x256xf32> to vector<1x8x256xf32>
    %cst_5 = arith.constant dense<0.000000e+00> : vector<1xf32>
    %6 = vector.multi_reduction <add>, %5, %cst_5 [1, 2] : vector<1x8x256xf32> to vector<1xf32>
    %7 = vector.shape_cast %6 : vector<1xf32> to vector<1x1x1xf32>
    %8 = vector.extract %7[0, 0, 0] : f32 from vector<1x1x1xf32>
    %cst_6 = arith.constant 2.048000e+03 : f32
    %9 = arith.divf %8, %cst_6 : f32
    %10 = vector.broadcast %9 : f32 to vector<8x256xf32>
    %11 = arith.subf %4, %10 : vector<8x256xf32>
    %12 = arith.mulf %11, %11 : vector<8x256xf32>
    %13 = vector.shape_cast %12 : vector<8x256xf32> to vector<1x8x256xf32>
    %cst_7 = arith.constant dense<0.000000e+00> : vector<1xf32>
    %14 = vector.multi_reduction <add>, %13, %cst_7 [1, 2] : vector<1x8x256xf32> to vector<1xf32>
    %15 = vector.shape_cast %14 : vector<1xf32> to vector<1x1x1xf32>
    %16 = vector.extract %15[0, 0, 0] : f32 from vector<1x1x1xf32>
    %cst_8 = arith.constant 2.048000e+03 : f32
    %17 = arith.divf %16, %cst_8 : f32
    %cst_9 = arith.constant 9.99999974E-6 : f32
    %18 = arith.addf %17, %cst_9 : f32
    %19 = math.rsqrt %18 : f32
    %c0_10 = arith.constant 0 : index
    %c0_11 = arith.constant 0 : index
    %20 = vector.load %arg3[%c0_10, %c0_11] : memref<8x1xf32, #tpu.memory_space<vmem>>, vector<8x1xf32>
    %21 = vector.broadcast %19 : f32 to vector<8x1xf32>
    %22 = arith.mulf %20, %21 : vector<8x1xf32>
    %23 = vector.broadcast %22 : vector<8x1xf32> to vector<8x256xf32>
    %24 = arith.mulf %11, %23 : vector<8x256xf32>
    %c0_12 = arith.constant 0 : index
    %c0_13 = arith.constant 0 : index
    %25 = vector.load %arg4[%c0_12, %c0_13] : memref<8x1xf32, #tpu.memory_space<vmem>>, vector<8x1xf32>
    %26 = vector.broadcast %25 : vector<8x1xf32> to vector<8x256xf32>
    %27 = arith.addf %24, %26 : vector<8x256xf32>
    %cst_14 = arith.constant 0.000000e+00 : f32
    %28 = vector.broadcast %cst_14 : f32 to vector<8x256xf32>
    %29 = arith.maximumf %27, %28 : vector<8x256xf32>
    %c0_15 = arith.constant 0 : index
    %c0_16 = arith.constant 0 : index
    %c0_17 = arith.constant 0 : index
    %30 = vector.load %arg5[%c0_15, %c0_16, %c0_17] : memref<1x8x256xf32, #tpu.memory_space<vmem>>, vector<1x8x256xf32>
    %31 = vector.shape_cast %30 : vector<1x8x256xf32> to vector<8x256xf32>
    %32 = vector.shape_cast %29 : vector<8x256xf32> to vector<1x8x256xf32>
    tpu.vector_store %arg5[%c0_15, %c0_16, %c0_17], %32 {strides = array<i32>} : memref<1x8x256xf32, #tpu.memory_space<vmem>>, vector<1x8x256xf32>,
    return
  }
  func.func @transform_0(%arg0: i32) -> (i32, i32, i32, i32) {
    %c0_i32 = arith.constant 0 : i32
    %c0_i32_0 = arith.constant 0 : i32
    %c0_i32_1 = arith.constant 0 : i32
    %c0_i32_2 = arith.constant 0 : i32
    return %arg0, %c0_i32, %c0_i32_0, %c0_i32_1 : i32, i32, i32, i32
  }
  func.func @transform_1(%arg0: i32) -> (i32, i32) {
    %c0_i32 = arith.constant 0 : i32
    %c0_i32_0 = arith.constant 0 : i32
    %c0_i32_1 = arith.constant 0 : i32
    return %c0_i32, %c0_i32_0 : i32, i32
  }
  func.func @transform_2(%arg0: i32) -> (i32, i32) {
    %c0_i32 = arith.constant 0 : i32
    %c0_i32_0 = arith.constant 0 : i32
    %c0_i32_1 = arith.constant 0 : i32
    return %c0_i32, %c0_i32_0 : i32, i32
  }
  func.func @transform_3(%arg0: i32) -> (i32, i32) {
    %c0_i32 = arith.constant 0 : i32
    %c0_i32_0 = arith.constant 0 : i32
    %c0_i32_1 = arith.constant 0 : i32
    return %c0_i32, %c0_i32_0 : i32, i32
  }
  func.func @transform_4(%arg0: i32) -> (i32, i32, i32) {
    %c0_i32 = arith.constant 0 : i32
    %c0_i32_0 = arith.constant 0 : i32
    %c0_i32_1 = arith.constant 0 : i32
    return %arg0, %c0_i32, %c0_i32_0 : i32, i32, i32
  }
}

</mosaic_0001>

<bundles_post_ra>
// kernel: tpu_custom_call.1
= control target key start
LH: loop header
LB: loop body
LE: loop exit
PB: predicated region body
PF: predicated region fallthrough
CT: control target
= control target key end

     0   :  { %9 = vsyncpa [#allocation3], 0  ;;  %s658_s0 = inlined_call_operand.vmem [shape: bf16[2,1,4,256], index: 0, kind: input, shape index: {}]   ;;  %s659_s1 = inlined_call_operand.vmem [shape: bf16[8,4], index: 1, kind: input, shape index: {}]   ;;  %s660_s2 = inlined_call_operand.vmem [shape: f32[8,1], index: 2, kind: input, shape index: {}]   ;;  %s661_s3 = inlined_call_operand.vmem [shape: f32[8,1], index: 3, kind: input, shape index: {}]   ;;  %s662_s4 = inlined_call_operand.hbm [shape: f32[2,8,256], index: 4, kind: output, shape index: {}]  }
   0x1   :  { %11 = vsyncpa [#allocation3 + $0x1], 0  ;;  %s549_s15 = smov 0   ;;  %s551_s16 = smov 0  }
   0x2   :  { %s553_s17 = smov 0   ;;  %s555_s18 = smov 0  }
   0x3 LB: > { %s570_s19 = sadd.s32 4294967295, %s520_s18   ;;  %s391_s20 = sadd.s32 4294967294, %s520_s18   ;;  %s520_s18 = sphi %s555_s18, %s668_s18   ;;  %s516_s17 = sphi %s553_s17, %s667_s17   ;;  %s512_s16 = sphi %s551_s16, %s666_s16   ;;  %s508_s15 = sphi %s549_s15, %s665_s15  }
   0x4   : > { %s574_s21 = sadd.s32 1, %s520_s18   ;;  %s113_s22 = sadd.s32 1, %s516_s17 }
   0x5   : > { %s110_s23 = ssub.s32 %s520_s18, %s574_s21  ;;  %p123_p0 = scmp.ne.s32.totalorder %s516_s17, %s512_s16 }
   0x6   : > { %p111_p1 = scmp.eq.s32.totalorder %s110_s23, 0  ;;  %p124_p2 = scmp.eq.s32.totalorder %s570_s19, 1 }
   0x7   : > { %p129_p3 = scmp.ne.s32.totalorder %s512_s16, %s508_s15  ;;  %p130_p4 = scmp.eq.s32.totalorder %s391_s20, 1 }
   0x8   : > { %s585_s24 = scalar_select %p111_p1, %s516_s17, %s113_s22  }
   0x9   : > { %p587_p5 = por %p124_p2, %p123_p0  ;;  %p591_p6 = por %p130_p4, %p129_p3 }
   0xa   : > { %p394_p7 = scmp.ge.s32.totalorder %s520_s18, 1  ;;  %p165_p8 = scmp.lt.s32.totalorder %s520_s18, 3 }
   0xc   : > { %p166_p9 = pnand %p394_p7, %p165_p8 }
   0xd   : > { %p191_p10 = scmp.lt.s32.totalorder (!%p166_p9), %s570_s19, 1  ;;  %v522_v0 = vmov (!%p166_p9), 0   ;;  %vm212_vm0 = vcmask (!%p166_p9), 1041408   ;;  %v198_v4 = vld [vmem:[%s659_s1] sm:$0xf] (!%p166_p9)  ;;  %vm208_vm1 = vcmask (!%p166_p9), 31744  }
   0xe   : > { %169 = sbr.rel (%p166_p9) target bundleno = 883 (0x373), region = 36  ;;  %251 = vmatprep.mubr.bf16.mxu0 (!%p166_p9), %v522_v0  ;;  %454 = vset.pattern.permute.xlu1 (!%p166_p9), %v522_v0  ;;  %v295_v32 = vld [vmem:[%s660_s2] sm:$0xff] (!%p166_p9)  ;;  %s407_s29 = sshll.u32 (!%p166_p9), %s570_s19, 8 }
   0xf   : > { %455 = vset.pattern.permute.xlu0 (!%p166_p9), %v522_v0  ;;  %v305_v35 = vld [vmem:[%s661_s3] sm:$0xff] (!%p166_p9) }
  0x15   : > { %s192_s27 = scalar_select %p191_p10, %s570_s19, 1 }
  0x17   : > { %s406_s28 = sshll.u32 %s192_s27, 2  ;;  %s188_s27 = sand.u32 1, %s512_s16  }
  0x18   : > { %s195_s5 = scalar_lea.vmem %s658_s0, %s406_s28  ;;  %s395_s28 = sshll.u32 %s188_s27, 4 }
  0x19   : > { %v398_v1 = vld.sshfl [vmem:[%s195_s5] sm:$0x33 pattern:$0x76325410]  ;;  %s190_s30 = scalar_lea.vmem [#allocation2], %s395_s28 }
  0x1a   : > { %v207_v2 = vcombine.high %v398_v1, %v398_v1  ;;  %v214_v3 = vsel %vm212_vm0, %v398_v1, 0  ;;  %s332_s5 = sshll.u32 %s190_s30, 4  ;;  %s618_s5 = int_to_ptr.vmem [resolvable:$true] %s332_s5 }
  0x1b   : > { %s458_s19 = scalar_lea.vmem %s618_s5, 256 }
  0x1c   : > { %399 = vmatprep.subr.msk.bf16.mxu0 %vm212_vm0, %v207_v2  ;;  %p459_p11 = scmp.ne.s32.totalorder %s618_s5, %s458_s19 }
  0x1d   : > { %220 = vmatpush1.bf16.msra.mxu0 %v214_v3 }
  0x1e   : > { %p460_p12 = pnand %p459_p11, %p587_p5 }
  0x20   : > { %400 = vmatmul.mubr.msk.bf16.vlgmr.msra.gmra.mrb[0].mxu0 %vm208_vm1, %v198_v4  ;;  %p461_p13 = pneg %p460_p12 }
  0xf3   : > { %v253_v5 = vpop.f32.mrb[0].mxu0 }
  0xf4   : > { %v255_v6 = vpop.f32.mrb[1].mxu0 }
  0xf5   : > { %v257_v7 = vpop.f32.mrb[2].mxu0  ;;  %v260_v8 = vadd.f32 %v255_v6, %v253_v5 }
  0xf6   : > { %v258_v9 = vpop.f32.mrb[3].mxu0 }
  0xf7   : > { %261 = vadd.xlane.f32.xlu0 %v260_v8 }
 0x184   : > { %v262_v10 = vpop.xlane.xlu0 %261 }
 0x185   : > { %v263_v11 = vrot.slane %v262_v10, 4 }
 0x187   : > { %v264_v12 = vadd.f32 %v263_v11, %v262_v10 }
 0x189   : > { %v265_v13 = vrot.slane %v264_v12, 2 }
 0x18b   : > { %v266_v14 = vadd.f32 %v265_v13, %v264_v12 }
 0x18d   : > { %v267_v15 = vrot.slane %v266_v14, 1 }
 0x18f   : > { %v268_v16 = vadd.f32 %v267_v15, %v266_v14 }
 0x191   : > { %408 = vpush %v268_v16 }
 0x1c2   : > { %s409_s8 = spop %408 }
 0x1c3   : > { %s272_s9 = smul.f32 0.00048828125, %s409_s8  ;;  %s616_s8 = scalar_lea.hbm %s662_s4, %s407_s29 }
 0x1c5   : > { %v273_v17 = vstv %s272_s9  ;;  %s318_s9 = scalar_lea.sflag [#allocation3], %s188_s27 }
 0x1c6   : > { %v274_v18 = vsub.f32 %v253_v5, %v273_v17  ;;  %v275_v19 = vsub.f32 %v255_v6, %v273_v17 }
 0x1c8   : > { %v276_v20 = vmul.f32 %v274_v18, %v274_v18  ;;  %v277_v21 = vmul.f32 %v275_v19, %v275_v19 }
 0x1ca   : > { %v278_v22 = vadd.f32 %v277_v21, %v276_v20 }
 0x1cc   : > { %279 = vadd.xlane.f32.xlu0 %v278_v22 }
 0x259   : > { %v280_v23 = vpop.xlane.xlu0 %279 }
 0x25a   : > { %v281_v24 = vrot.slane %v280_v23, 4 }
 0x25c   : > { %v282_v25 = vadd.f32 %v281_v24, %v280_v23 }
 0x25e   : > { %v283_v26 = vrot.slane %v282_v25, 2 }
 0x260   : > { %v284_v27 = vadd.f32 %v283_v26, %v282_v25 }
 0x262   : > { %v285_v28 = vrot.slane %v284_v27, 1 }
 0x264   : > { %v286_v29 = vadd.f32 %v285_v28, %v284_v27 }
 0x266   : > { %410 = vpush %v286_v29 }
 0x297   : > { %s411_s10 = spop %410 }
 0x298   : > { %s290_s11 = smul.f32 0.00048828125, %s411_s10  ;;  %s523_s10 = smov [#allocation2]  }
 0x29a   : > { %s291_s12 = sadd.f32 1e-05, %s290_s11  ;;  %s462_s11 = sshll.u32 %s523_s10, 4  ;;  %s463_s11 = int_to_ptr.vmem [resolvable:$false] %s462_s11 }
 0x29b   : > { %p465_p0 = scmp.lt.s32.totalorder %s618_s5, %s463_s11 }
 0x29c   : > { %v292_v30 = vstv %s291_s12  ;;  %s464_s12 = scalar_lea.vmem %s463_s11, 512 }
 0x29d   : > { %456 = vrsqrt.f32 %v292_v30  ;;  %p466_p1 = scmp.lt.s32.totalorder %s464_s12, %s458_s19 }
 0x29f   : > { %p467_p2 = por %p466_p1, %p465_p0 }
 0x2a1   : > { %p468_p3 = pnand %p467_p2, %p461_p13 }
 0x2a7   : > { %v457_v31 = vpop.eup %456 }
 0x2a8   : > { %412 = vpush %v457_v31 }
 0x2d9   : > { %s413_s20 = spop %412 }
 0x2da   : > { %v296_v33 = vstv %s413_s20 }
 0x2db   : > { %v297_v34 = vmul.f32 %v296_v33, %v295_v32 }
 0x2dd   : > { %300 = vperm.xlu1 %454, %v297_v34  }
 0x2e1   : > { %308 = vperm.xlu1 %454, %v305_v35  }
 0x35c   : > { %v301_v36 = vpop.permute.xlu1 %300 }
 0x35d   : > { %v303_v37 = vmul.f32 %v301_v36, %v274_v18  ;;  %v304_v38 = vmul.f32 %v301_v36, %v275_v19 }
 0x360   : > { %v309_v39 = vpop.permute.xlu1 %308 }
 0x361   : > { %v311_v40 = vadd.f32 %v309_v39, %v303_v37  ;;  %v312_v41 = vadd.f32 %v309_v39, %v304_v38 }
 0x363   : > { %v313_v42 = vmax.f32 %v311_v40, 0.0  ;;  %v314_v43 = vmax.f32 %v312_v41, 0.0 }
 0x365   : > { %315 = vst [vmem:[%s190_s30] sm:$0xff] %v313_v42  ;;  %316 = vst [vmem:[%s190_s30 + $0x8] sm:$0xff] %v314_v43 }
 0x366   : > { %471 = shalt.err (!%p468_p3)
}
 0x367   : > { %s472_s13 = scalar_lea.hbm %s616_s8, 256  ;;  %s476_s22 = scalar_lea.hbm %s662_s4, 512 }
 0x368   : > { %p473_p4 = scmp.ne.s32.totalorder %s616_s8, %s472_s13  ;;  %p477_p9 = scmp.lt.u32.totalorder %s616_s8, %s662_s4 }
 0x369   : > { %p478_p10 = scmp.lt.u32.totalorder %s476_s22, %s472_s13  ;;  %p480_p12 = scmp.lt.u32.totalorder %s472_s13, %s616_s8 }
 0x36a   : > { %p474_p7 = pnand %p473_p4, %p587_p5 }
 0x36b   : > { %p479_p11 = por %p478_p10, %p477_p9 }
 0x36c   : > { %p475_p8 = pneg %p474_p7 }
 0x36d   : > { %p481_p13 = por %p480_p12, %p479_p11 }
 0x36f   : > { %p482_p0 = pnand %p481_p13, %p475_p8 }
 0x371   : > { %485 = shalt.err (!%p482_p0)
}
 0x372   : > { %414 = dma.vmem_to_hbm [thread:$0]  (%p587_p5), %s618_s5, 256, %s616_s8, %s318_s9  }
 0x373 PF: > { %p420_p1 = scmp.ge.s32.totalorder %s520_s18, 2  ;;  %s344_s28 = sand.u32 1, %s508_s15  }
 0x374   : > { %s345_s29 = scalar_lea.sflag [#allocation3], %s344_s28 }
 0x375   : > { %p417_p2 = pnand %p420_p1, %p591_p6 }
 0x377   : > { %503 = dma.done.wait (!%p417_p2), %s345_s29, 256  }
 0x378   : > { %505 = vsyncadd (!%p417_p2), %s345_s29, 4294967040  ;;  %p14_p3 = scmp.ge.s32.totalorder %s574_s21, 4   ;;  %s665_s15 = smov %s512_s16 }
 0x379   : > { %s666_s16 = smov %s516_s17  ;;  %s667_s17 = smov %s585_s24 }
 0x37a   : > { %s668_s18 = smov %s574_s21  ;;  %16 = sbr.rel (!%p14_p3) target bundleno = 3 (0x3), region = 71 }
 0x381   :  { %350 = vsyncpa [#allocation3], 1 }
 0x382   :  { %352 = vsyncpa [#allocation3 + $0x1], 1 }

</bundles_post_ra>
